<compile_context>
chip_gen: v7x
topology: tpu7x:2x2x1
jax: 0.10.0
libtpu: 0.0.40
codegen_flags: <defaults>
</compile_context>

<pallas_src>
import numpy as np
import jax
import jax.numpy as jnp
from jax.experimental import pallas as pl
from jax.experimental.pallas import tpu as pltpu

LAMDA_OL = 0.6
NUM_SAMPLE_MIOL = 15
LANE = 128           # class dim padded to one full vreg lane width
NEG_INF = -1e30      # finite "minus infinity" for padded class lanes


def _round_up(x, m):
    return (x + m - 1) // m * m


# ----------------------------- Pallas kernel ---------------------------------
#
# Single fused grid step:
#   pool_lin = pool_rows @ W          one (KBp, D) x (D, 128) bf16 MXU matmul, f32 acc
#   img_rows = sel @ img_lin          broadcast the (reused) clean img@W to every sample row
#   logits   = lam*img_rows + (1-lam)*pool_lin + bias       (linearity of the mixup)
#   probs    = softmax(logits)        padded lanes -> exp(-1e30 - m) == 0
#   out      = (selT @ probs) / 15    grouped sum over the 15 samples per batch row
#
def _mixup_mean_probs_kernel(sel_ref, selT_ref, img_lin_ref, pool_ref, w_ref,
                             b_ref, out_ref):
    pool_lin = jnp.dot(pool_ref[...], w_ref[...],
                       preferred_element_type=jnp.float32)           # (KBp, CP)
    img_rows = jnp.dot(sel_ref[...], img_lin_ref[...],
                       preferred_element_type=jnp.float32)           # (KBp, CP)
    logits = LAMDA_OL * img_rows + (1.0 - LAMDA_OL) * pool_lin + b_ref[...]

    m = jnp.max(logits, axis=-1, keepdims=True)
    e = jnp.exp(logits - m)
    probs = e * pl.reciprocal(jnp.sum(e, axis=-1, keepdims=True), approx=True)

    summed = jnp.dot(selT_ref[...], probs,
                     preferred_element_type=jnp.float32)              # (B, CP)
    out_ref[...] = summed * (1.0 / NUM_SAMPLE_MIOL)


# ------------------------------ wrappers --------------------------------------

def mixup_mean_probs(img_lin_pad, pool_rows, w_pad, b_pad, sel, selT):
    """One fused pallas_call: classify + softmax + mean over all mixup samples."""
    KBp, D = pool_rows.shape
    B, CP = img_lin_pad.shape
    # Everything fits easily in VMEM at these sizes (pool 64 KiB bf16, W 256 KiB bf16).
    # TODO(synk): for large D/B (real image sizes on v7x 64 MiB VMEM) tile D and the
    #             sample-row axis with a proper grid instead of full-array blocks.
    return pl.pallas_call(
        _mixup_mean_probs_kernel,
        out_shape=jax.ShapeDtypeStruct((B, CP), jnp.float32),
        grid=(1,),
        in_specs=[
            pl.BlockSpec((KBp, B), lambda i: (0, 0)),
            pl.BlockSpec((B, KBp), lambda i: (0, 0)),
            pl.BlockSpec((B, CP), lambda i: (0, 0)),
            pl.BlockSpec((KBp, D), lambda i: (0, 0)),
            pl.BlockSpec((D, CP), lambda i: (0, 0)),
            pl.BlockSpec((1, CP), lambda i: (0, 0)),
        ],
        out_specs=pl.BlockSpec((B, CP), lambda i: (0, 0)),
        compiler_params=pltpu.CompilerParams(
            dimension_semantics=("arbitrary",)),
    )(sel, selT, img_lin_pad, pool_rows, w_pad, b_pad)


def combined_model_forward(img_nchw, w, b, mixup_pool, n_classes):
    """Full CombinedModel.forward (default flags), deterministic=True semantics."""
    B, C_in, H, W = img_nchw.shape
    D = C_in * H * W
    pool_size = mixup_pool.shape[1]
    img_flat = img_nchw.reshape(B, D)

    # 1) clean logits: tiny (B,D)@(D,C) — plain XLA, no pallas_call launch needed.
    #    img_lin (= img @ W, no bias) is reused by the fused kernel via linearity.
    img_lin = img_flat @ w
    pred_cle = img_lin + b
    predicted_cle = np.asarray(jnp.argmax(pred_cle, axis=1))   # host sync (== .cpu().numpy())

    # 2) host-side RNG sampling of (class, index) pairs — exact original rejection-sampling
    #    order with seed 0 (deterministic=True). Only int32 indices are produced on host;
    #    image data never leaves the device.
    rng = np.random.default_rng(seed=0)
    KB = NUM_SAMPLE_MIOL * B
    KBp = _round_up(KB, 8)                     # pad matmul M dim to a sublane multiple
    flat_idx = np.zeros((KBp,), dtype=np.int32)
    for k in range(NUM_SAMPLE_MIOL):
        for bi in range(B):
            lbl = rng.integers(n_classes)
            while lbl == predicted_cle[bi]:
                lbl = rng.integers(n_classes)
            idx = rng.integers(pool_size)
            flat_idx[k * B + bi] = lbl * pool_size + idx

    # selection matrices: sel[r, b] = 1 iff sample-row r belongs to batch element b
    # (zero rows for the padding rows, so they never contribute to the mean)
    sel = np.zeros((KBp, B), dtype=np.float32)
    rows = np.arange(KB)
    sel[rows, rows % B] = 1.0
    selT = np.ascontiguousarray(sel.T)

    # 3) on-device gather of the sampled pool images (no (K,B,D) host->device copy)
    pool_all = mixup_pool.reshape(n_classes * pool_size, D)
    pool_rows = jnp.take(pool_all, jnp.asarray(flat_idx), axis=0)      # (KBp, D)

    # 4) pad the class dim to 128 lanes; bf16 matmul operands, f32 accumulation.
    CP = LANE  # TODO(synk): tile the class dim if n_classes > 128
    w_pad = jnp.zeros((D, CP), jnp.float32).at[:, :n_classes].set(w).astype(jnp.bfloat16)
    b_pad = jnp.full((1, CP), NEG_INF, jnp.float32).at[:, :n_classes].set(b)
    img_lin_pad = jnp.zeros((B, CP), jnp.float32).at[:, :n_classes].set(img_lin)

    out_pad = mixup_mean_probs(img_lin_pad, pool_rows.astype(jnp.bfloat16),
                               w_pad, b_pad, jnp.asarray(sel), jnp.asarray(selT))
    return out_pad[:, :n_classes]


# ------------------------------- main -----------------------------------------

if __name__ == "__main__":
    B, C_in, H, W = 2, 4, 16, 16
    N_CLASSES = 10
    POOL_SIZE = 3
    D = C_in * H * W

    key = jax.random.PRNGKey(0)
    k_img, k_pool, k_w, k_b = jax.random.split(key, 4)

    img = jax.random.normal(k_img, (B, C_in, H, W), dtype=jnp.float32)
    mixup_pool = jax.random.normal(
        k_pool, (N_CLASSES, POOL_SIZE, C_in, H, W), dtype=jnp.float32)

    # deterministic synthetic classifier params (linear head over flattened NCHW)
    w = jax.random.normal(k_w, (D, N_CLASSES), dtype=jnp.float32) * 0.02
    b = jax.random.normal(k_b, (1, N_CLASSES), dtype=jnp.float32) * 0.1

    out = combined_model_forward(img, w, b, mixup_pool, N_CLASSES)
    out = jax.block_until_ready(out)

    # reference check: exact original f32 semantics with the same RNG stream
    img_flat_np = np.asarray(img.reshape(B, D))
    w_np = np.asarray(w)
    b_np = np.asarray(b)
    pred_cle_np = img_flat_np @ w_np + b_np
    predicted_cle = np.argmax(pred_cle_np, axis=1)
    rng = np.random.default_rng(seed=0)
    pool_np = np.asarray(mixup_pool).reshape(N_CLASSES, POOL_SIZE, D)
    acc = np.zeros((B, N_CLASSES), np.float64)
    for k in range(NUM_SAMPLE_MIOL):
        mix = np.empty((B, D), np.float32)
        for bi in range(B):
            lbl = rng.integers(N_CLASSES)
            while lbl == predicted_cle[bi]:
                lbl = rng.integers(N_CLASSES)
            idx = rng.integers(POOL_SIZE)
            mix[bi] = LAMDA_OL * img_flat_np[bi] + (1.0 - LAMDA_OL) * pool_np[lbl, idx]
        logits = mix @ w_np + b_np
        ex = np.exp(logits - logits.max(axis=-1, keepdims=True))
        acc += ex / ex.sum(axis=-1, keepdims=True)
    ref = acc / NUM_SAMPLE_MIOL

    np.testing.assert_allclose(np.asarray(out), ref, rtol=1e-2, atol=3e-3)
    assert out.shape == (B, N_CLASSES)
    print("KERNEL_OK")
</pallas_src>

<mosaic_0001>
module attributes {stable_mosaic.version = 11 : i64} {
  func.func @_mixup_mean_probs_kernel(%arg0: i32, %arg1: memref<32x2xf32, #tpu.memory_space<vmem>>, %arg2: memref<2x32xf32, #tpu.memory_space<vmem>>, %arg3: memref<2x128xf32, #tpu.memory_space<vmem>>, %arg4: memref<32x1024xbf16, #tpu.memory_space<vmem>>, %arg5: memref<1024x128xbf16, #tpu.memory_space<vmem>>, %arg6: memref<1x128xf32, #tpu.memory_space<vmem>>, %arg7: memref<2x128xf32, #tpu.memory_space<vmem>>) attributes {dimension_semantics = [#tpu.dimension_semantics<arbitrary>], iteration_bounds = array<i64: 1>, scalar_prefetch = 0 : i64, scratch_operands = 0 : i64, tpu.core_type = #tpu.core_type<tc>, window_params = [{pipeline_mode = #tpu.pipeline_mode<synchronous>, transform_indices = @transform_0, window_bounds = array<i64: 32, 2>}, {pipeline_mode = #tpu.pipeline_mode<synchronous>, transform_indices = @transform_1, window_bounds = array<i64: 2, 32>}, {pipeline_mode = #tpu.pipeline_mode<synchronous>, transform_indices = @transform_2, window_bounds = array<i64: 2, 128>}, {pipeline_mode = #tpu.pipeline_mode<synchronous>, transform_indices = @transform_3, window_bounds = array<i64: 32, 1024>}, {pipeline_mode = #tpu.pipeline_mode<synchronous>, transform_indices = @transform_4, window_bounds = array<i64: 1024, 128>}, {pipeline_mode = #tpu.pipeline_mode<synchronous>, transform_indices = @transform_5, window_bounds = array<i64: 1, 128>}, {pipeline_mode = #tpu.pipeline_mode<synchronous>, transform_indices = @transform_6, window_bounds = array<i64: 2, 128>}]} {
    %c0 = arith.constant 0 : index
    %c0_0 = arith.constant 0 : index
    %0 = vector.load %arg4[%c0, %c0_0] : memref<32x1024xbf16, #tpu.memory_space<vmem>>, vector<32x1024xbf16>
    %c0_1 = arith.constant 0 : index
    %c0_2 = arith.constant 0 : index
    %1 = vector.load %arg5[%c0_1, %c0_2] : memref<1024x128xbf16, #tpu.memory_space<vmem>>, vector<1024x128xbf16>
    %cst = arith.constant dense<0.000000e+00> : vector<32x128xf32>
    %2 = tpu.matmul %0, %1, %cst {dimension_numbers = #tpu.dot_dimension_numbers<[1], [0], [0], [1], [0, 0, 1, 1], [], []>} : vector<32x1024xbf16>, vector<1024x128xbf16>, vector<32x128xf32> -> vector<32x128xf32>
    %c0_3 = arith.constant 0 : index
    %c0_4 = arith.constant 0 : index
    %3 = vector.load %arg1[%c0_3, %c0_4] : memref<32x2xf32, #tpu.memory_space<vmem>>, vector<32x2xf32>
    %c0_5 = arith.constant 0 : index
    %c0_6 = arith.constant 0 : index
    %4 = vector.load %arg3[%c0_5, %c0_6] : memref<2x128xf32, #tpu.memory_space<vmem>>, vector<2x128xf32>
    %cst_7 = arith.constant dense<0.000000e+00> : vector<32x128xf32>
    %5 = tpu.matmul %3, %4, %cst_7 {dimension_numbers = #tpu.dot_dimension_numbers<[1], [0], [0], [1], [0, 0, 1, 1], [], []>} : vector<32x2xf32>, vector<2x128xf32>, vector<32x128xf32> -> vector<32x128xf32>
    %cst_8 = arith.constant 6.000000e-01 : f32
    %6 = vector.broadcast %cst_8 : f32 to vector<32x128xf32>
    %7 = arith.mulf %6, %5 : vector<32x128xf32>
    %cst_9 = arith.constant 4.000000e-01 : f32
    %8 = vector.broadcast %cst_9 : f32 to vector<32x128xf32>
    %9 = arith.mulf %8, %2 : vector<32x128xf32>
    %10 = arith.addf %7, %9 : vector<32x128xf32>
    %c0_10 = arith.constant 0 : index
    %c0_11 = arith.constant 0 : index
    %11 = vector.load %arg6[%c0_10, %c0_11] : memref<1x128xf32, #tpu.memory_space<vmem>>, vector<1x128xf32>
    %12 = vector.broadcast %11 : vector<1x128xf32> to vector<32x128xf32>
    %13 = arith.addf %10, %12 : vector<32x128xf32>
    %cst_12 = arith.constant dense<0xFF800000> : vector<32xf32>
    %14 = vector.multi_reduction <maximumf>, %13, %cst_12 [1] : vector<32x128xf32> to vector<32xf32>
    %15 = vector.shape_cast %14 : vector<32xf32> to vector<32x1xf32>
    %16 = vector.broadcast %15 : vector<32x1xf32> to vector<32x128xf32>
    %17 = arith.subf %13, %16 : vector<32x128xf32>
    %18 = math.exp %17 : vector<32x128xf32>
    %cst_13 = arith.constant dense<0.000000e+00> : vector<32xf32>
    %19 = vector.multi_reduction <add>, %18, %cst_13 [1] : vector<32x128xf32> to vector<32xf32>
    %20 = vector.shape_cast %19 : vector<32xf32> to vector<32x1xf32>
    %21 = tpu.reciprocal %20 {approx = true} : vector<32x1xf32> -> vector<32x1xf32>
    %22 = vector.broadcast %21 : vector<32x1xf32> to vector<32x128xf32>
    %23 = arith.mulf %18, %22 : vector<32x128xf32>
    %c0_14 = arith.constant 0 : index
    %c0_15 = arith.constant 0 : index
    %24 = vector.load %arg2[%c0_14, %c0_15] : memref<2x32xf32, #tpu.memory_space<vmem>>, vector<2x32xf32>
    %cst_16 = arith.constant dense<0.000000e+00> : vector<2x128xf32>
    %25 = tpu.matmul %24, %23, %cst_16 {dimension_numbers = #tpu.dot_dimension_numbers<[1], [0], [0], [1], [0, 0, 1, 1], [], []>} : vector<2x32xf32>, vector<32x128xf32>, vector<2x128xf32> -> vector<2x128xf32>
    %cst_17 = arith.constant 0.0666666701 : f32
    %26 = vector.broadcast %cst_17 : f32 to vector<2x128xf32>
    %27 = arith.mulf %25, %26 : vector<2x128xf32>
    %c0_18 = arith.constant 0 : index
    %c0_19 = arith.constant 0 : index
    %28 = vector.load %arg7[%c0_18, %c0_19] : memref<2x128xf32, #tpu.memory_space<vmem>>, vector<2x128xf32>
    tpu.vector_store %arg7[%c0_18, %c0_19], %27 {strides = array<i32>} : memref<2x128xf32, #tpu.memory_space<vmem>>, vector<2x128xf32>,
    return
  }
  func.func @transform_0(%arg0: i32) -> (i32, i32) {
    %c0_i32 = arith.constant 0 : i32
    %c0_i32_0 = arith.constant 0 : i32
    %c0_i32_1 = arith.constant 0 : i32
    return %c0_i32, %c0_i32_0 : i32, i32
  }
  func.func @transform_1(%arg0: i32) -> (i32, i32) {
    %c0_i32 = arith.constant 0 : i32
    %c0_i32_0 = arith.constant 0 : i32
    %c0_i32_1 = arith.constant 0 : i32
    return %c0_i32, %c0_i32_0 : i32, i32
  }
  func.func @transform_2(%arg0: i32) -> (i32, i32) {
    %c0_i32 = arith.constant 0 : i32
    %c0_i32_0 = arith.constant 0 : i32
    %c0_i32_1 = arith.constant 0 : i32
    return %c0_i32, %c0_i32_0 : i32, i32
  }
  func.func @transform_3(%arg0: i32) -> (i32, i32) {
    %c0_i32 = arith.constant 0 : i32
    %c0_i32_0 = arith.constant 0 : i32
    %c0_i32_1 = arith.constant 0 : i32
    return %c0_i32, %c0_i32_0 : i32, i32
  }
  func.func @transform_4(%arg0: i32) -> (i32, i32) {
    %c0_i32 = arith.constant 0 : i32
    %c0_i32_0 = arith.constant 0 : i32
    %c0_i32_1 = arith.constant 0 : i32
    return %c0_i32, %c0_i32_0 : i32, i32
  }
  func.func @transform_5(%arg0: i32) -> (i32, i32) {
    %c0_i32 = arith.constant 0 : i32
    %c0_i32_0 = arith.constant 0 : i32
    %c0_i32_1 = arith.constant 0 : i32
    return %c0_i32, %c0_i32_0 : i32, i32
  }
  func.func @transform_6(%arg0: i32) -> (i32, i32) {
    %c0_i32 = arith.constant 0 : i32
    %c0_i32_0 = arith.constant 0 : i32
    %c0_i32_1 = arith.constant 0 : i32
    return %c0_i32, %c0_i32_0 : i32, i32
  }
}

</mosaic_0001>

<bundles_post_ra>
// kernel: tpu_custom_call.1
= control target key start
LH: loop header
LB: loop body
LE: loop exit
PB: predicated region body
PF: predicated region fallthrough
CT: control target
= control target key end

     0   :  { %11 = vsyncpa [#allocation3], 0  ;;  %s1614_s0 = inlined_call_operand.vmem [shape: f32[32,2], index: 0, kind: input, shape index: {}]   ;;  %s1615_s1 = inlined_call_operand.vmem [shape: f32[2,32], index: 1, kind: input, shape index: {}]   ;;  %s1616_s2 = inlined_call_operand.vmem [shape: f32[2,128], index: 2, kind: input, shape index: {}]   ;;  %s1617_s3 = inlined_call_operand.hbm [shape: bf16[32,1024], index: 3, kind: input, shape index: {}]   ;;  %s1618_s4 = inlined_call_operand.hbm [shape: bf16[1024,128], index: 4, kind: input, shape index: {}]   ;;  %s1619_s5 = inlined_call_operand.vmem [shape: f32[1,128], index: 5, kind: input, shape index: {}]   ;;  %s1620_s6 = inlined_call_operand.hbm [shape: f32[2,128], index: 6, kind: output, shape index: {}]  }
   0x1   :  { %12 = vsyncpa [#allocation6], 0 }
   0x2   :  { %13 = vsyncpa [#allocation4], 0  ;;  %s1512_s21 = smov [#allocation2]   ;;  %s1440_s25 = scalar_lea.hbm %s1617_s3, 2048 }
   0x3   :  { %s25_s22 = sshll.u32 %s1512_s21, 4  ;;  %p1441_p0 = scmp.ne.s32.totalorder %s1617_s3, %s1440_s25  ;;  %s26_s22 = int_to_ptr.vmem [resolvable:$true] %s25_s22 }
   0x4   :  { %p1444_p1 = scmp.lt.u32.totalorder %s1440_s25, %s1617_s3 }
   0x6   :  { %p1446_p2 = pnand %p1444_p1, %p1441_p0 }
   0x8   :  { %1449 = shalt.err (!%p1446_p2)
}
   0x9   :  { %s1450_s30 = scalar_lea.vmem %s26_s22, 2048  ;;  %p1455_p4 = scmp.lt.s32.totalorder %s26_s22, %s26_s22 }
   0xa   :  { %p1451_p3 = scmp.ne.s32.totalorder %s26_s22, %s1450_s30  ;;  %p1456_p5 = scmp.lt.s32.totalorder %s1450_s30, %s1450_s30 }
   0xc   :  { %p1457_p6 = por %p1456_p5, %p1455_p4 }
   0xe   :  { %p1458_p7 = pnand %p1457_p6, %p1451_p3 }
  0x10   :  { %1461 = shalt.err (!%p1458_p7)
}
  0x11   :  { %s1513_s7 = smov 512   ;;  %s1514_s8 = smov 32  }
  0x12   :  { %31 = dma.hbm_to_vmem [thread:$0]  %s1617_s3, 2048, %s26_s22, [#allocation3], %s1513_s7, %s1513_s7, %s1514_s8  }
  0x13   :  { %s1515_s11 = smov [#allocation5]   ;;  %s1462_s15 = scalar_lea.hbm %s1618_s4, 8192 }
  0x14   :  { %s37_s12 = sshll.u32 %s1515_s11, 4  ;;  %p1463_p8 = scmp.ne.s32.totalorder %s1618_s4, %s1462_s15  ;;  %s38_s12 = int_to_ptr.vmem [resolvable:$true] %s37_s12 }
  0x15   :  { %p1466_p9 = scmp.lt.u32.totalorder %s1462_s15, %s1618_s4 }
  0x17   :  { %p1468_p10 = pnand %p1466_p9, %p1463_p8 }
  0x19   :  { %1471 = shalt.err (!%p1468_p10)
}
  0x1a   :  { %s1472_s20 = scalar_lea.vmem %s38_s12, 8192  ;;  %p1477_p12 = scmp.lt.s32.totalorder %s38_s12, %s38_s12 }
  0x1b   :  { %p1473_p11 = scmp.ne.s32.totalorder %s38_s12, %s1472_s20  ;;  %p1478_p13 = scmp.lt.s32.totalorder %s1472_s20, %s1472_s20 }
  0x1d   :  { %p1479_p0 = por %p1478_p13, %p1477_p12 }
  0x1f   :  { %p1480_p1 = pnand %p1479_p0, %p1473_p11 }
  0x21   :  { %1483 = shalt.err (!%p1480_p1)
}
  0x22   :  { %s1516_s3 = smov 64   ;;  %s1517_s21 = smov 4  }
  0x23   :  { %43 = dma.hbm_to_vmem [thread:$0]  %s1618_s4, 8192, %s38_s12, [#allocation6], %s1516_s3, %s1516_s3, %s1517_s21  }
  0x24   :  { %1506 = dma.done.wait [#allocation3], 2048  }
  0x25   :  { %1507 = vsyncadd [#allocation3], 4294965248 }
  0x26   :  { %1508 = dma.done.wait [#allocation6], 8192  }
  0x27   :  { %1509 = vsyncadd [#allocation6], 4294959104  ;;  %v1360_v0 = vld [vmem:[#allocation5 + $0x40] sm:$0xff]   ;;  %v1364_v4 = vld [vmem:[#allocation5 + $0x48] sm:$0xff]   ;;  %vm875_vm0 = vcmask 1041408   ;;  %vm862_vm1 = vcmask 15360  }
  0x28   :  { %v1361_v1 = vld [vmem:[#allocation5 + $0xc0] sm:$0xff]   ;;  %1203 = vmatprep.subr.bf16.mxu0 %v1360_v0  ;;  %v1365_v5 = vld [vmem:[#allocation5 + $0xc8] sm:$0xff]   ;;  %v1368_v8 = vld [vmem:[#allocation5 + $0x50] sm:$0xff]   ;;  %vm1519_vm2 = vmmov 0   ;;  %vm1024_vm3 = vcmask 261120   ;;  %s1521_s10 = smov [#allocation7]  }
  0x29   :  { %v1362_v2 = vld [vmem:[#allocation5] sm:$0xff]   ;;  %1231 = vmatprep.subr.bf16.mxu1 %v1361_v1  ;;  %v1366_v6 = vld [vmem:[#allocation5 + $0x8] sm:$0xff]   ;;  %v1369_v9 = vld [vmem:[#allocation5 + $0xd0] sm:$0xff]   ;;  %s1106_s11 = sshll.u32 %s1521_s10, 4  ;;  %s1107_s11 = int_to_ptr.vmem [resolvable:$true] %s1106_s11 }
  0x2a   :  { %v1363_v3 = vld [vmem:[#allocation5 + $0x80] sm:$0xff]   ;;  %1204 = vmatpush3.bf16.msra.mxu0 %v1362_v2  ;;  %v1367_v7 = vld [vmem:[#allocation5 + $0x88] sm:$0xff]   ;;  %v1370_v10 = vld [vmem:[#allocation5 + $0x10] sm:$0xff]   ;;  %s1484_s12 = scalar_lea.vmem %s1107_s11, 32  ;;  %p1489_p3 = scmp.lt.s32.totalorder %s1107_s11, %s1107_s11 }
  0x2b   :  { %1232 = vmatpush3.bf16.msra.mxu1 %v1363_v3  ;;  %1205 = vmatprep.subr.bf16.mxu0 %v1364_v4  ;;  %v1371_v11 = vld [vmem:[#allocation5 + $0x90] sm:$0xff]   ;;  %v1372_v12 = vld [vmem:[#allocation5 + $0x58] sm:$0xff]   ;;  %v1376_v16 = vld [vmem:[#allocation5 + $0x60] sm:$0xff]   ;;  %p1485_p2 = scmp.ne.s32.totalorder %s1107_s11, %s1484_s12  ;;  %p1490_p4 = scmp.lt.s32.totalorder %s1484_s12, %s1484_s12 }
  0x2c   :  { %1233 = vmatprep.subr.bf16.mxu1 %v1365_v5  ;;  %v1373_v13 = vld [vmem:[#allocation5 + $0xd8] sm:$0xff]   ;;  %v1377_v17 = vld [vmem:[#allocation5 + $0xe0] sm:$0xff]   ;;  %v1380_v20 = vld [vmem:[#allocation5 + $0x68] sm:$0xff]  }
  0x2d   :  { %v1374_v14 = vld [vmem:[#allocation5 + $0x18] sm:$0xff]   ;;  %v1378_v18 = vld [vmem:[#allocation5 + $0x20] sm:$0xff]   ;;  %v1381_v21 = vld [vmem:[#allocation5 + $0xe8] sm:$0xff]   ;;  %p1491_p5 = por %p1490_p4, %p1489_p3 }
  0x2e   :  { %1206 = vmatpush3.bf16.msra.mxu0 %v1366_v6  ;;  %v1375_v15 = vld [vmem:[#allocation5 + $0x98] sm:$0xff]   ;;  %v1379_v19 = vld [vmem:[#allocation5 + $0xa0] sm:$0xff]   ;;  %v1382_v22 = vld [vmem:[#allocation5 + $0x28] sm:$0xff]  }
  0x2f   :  { %1234 = vmatpush3.bf16.msra.mxu1 %v1367_v7  ;;  %1207 = vmatprep.subr.bf16.mxu0 %v1368_v8  ;;  %v1383_v23 = vld [vmem:[#allocation5 + $0xa8] sm:$0xff]   ;;  %v1384_v24 = vld [vmem:[#allocation5 + $0x70] sm:$0xff]   ;;  %v1388_v28 = vld [vmem:[#allocation5 + $0x78] sm:$0xff]   ;;  %p1492_p6 = pnand %p1491_p5, %p1485_p2 }
  0x30   :  { %1235 = vmatprep.subr.bf16.mxu1 %v1369_v9  ;;  %v1385_v25 = vld [vmem:[#allocation5 + $0xf0] sm:$0xff]   ;;  %v1389_v29 = vld [vmem:[#allocation5 + $0xf8] sm:$0xff]   ;;  %v53_v32 = vld [vmem:[#allocation2] sm:$0xff] }
  0x31   :  { %v1386_v26 = vld [vmem:[#allocation5 + $0x30] sm:$0xff]   ;;  %v1390_v30 = vld [vmem:[#allocation5 + $0x38] sm:$0xff]   ;;  %v57_v33 = vld [vmem:[#allocation2 + $0x20] sm:$0xff] }
  0x32   :  { %1208 = vmatpush3.bf16.msra.mxu0 %v1370_v10  ;;  %v1387_v27 = vld [vmem:[#allocation5 + $0xb0] sm:$0xff]   ;;  %v1391_v31 = vld [vmem:[#allocation5 + $0xb8] sm:$0xff]   ;;  %v54_v34 = vld [vmem:[#allocation2 + $0x8] sm:$0xff]  ;;  %v1116_v35 = vcombine.low %v53_v32, %v57_v33  ;;  %v1117_v36 = vcombine.high %v53_v32, %v57_v33 }
  0x33   :  { %1236 = vmatpush3.bf16.msra.mxu1 %v1371_v11  ;;  %1209 = vmatprep.subr.bf16.mxu0 %v1372_v12  ;;  %v58_v37 = vld [vmem:[#allocation2 + $0x28] sm:$0xff]  ;;  %v1392_v40 = vld [vmem:[#allocation5 + $0x140] sm:$0xff]   ;;  %v1400_v48 = vld [vmem:[#allocation5 + $0x150] sm:$0xff]  }
  0x34   :  { %1237 = vmatprep.subr.bf16.mxu1 %v1373_v13  ;;  %v1118_v38 = vcombine.low %v54_v34, %v58_v37  ;;  %v1119_v39 = vcombine.high %v54_v34, %v58_v37  ;;  %693 = vmatprep.mubr.bf16.mxu0 %v1117_v36  ;;  %v1393_v41 = vld [vmem:[#allocation5 + $0x100] sm:$0xff]   ;;  %v1396_v44 = vld [vmem:[#allocation5 + $0x148] sm:$0xff]   ;;  %v1401_v49 = vld [vmem:[#allocation5 + $0x110] sm:$0xff]  }
  0x35   :  { %v1394_v42 = vld [vmem:[#allocation5 + $0x1c0] sm:$0xff]   ;;  %v1397_v45 = vld [vmem:[#allocation5 + $0x108] sm:$0xff]   ;;  %v1402_v50 = vld [vmem:[#allocation5 + $0x1d0] sm:$0xff]  }
  0x36   :  { %1210 = vmatpush3.bf16.msra.mxu0 %v1374_v14  ;;  %742 = vmatprep.mubr.bf16.mxu1 %v1119_v39  ;;  %v1395_v43 = vld [vmem:[#allocation5 + $0x180] sm:$0xff]   ;;  %v1398_v46 = vld [vmem:[#allocation5 + $0x1c8] sm:$0xff]   ;;  %v1403_v51 = vld [vmem:[#allocation5 + $0x190] sm:$0xff]  }
  0x37   :  { %1238 = vmatpush3.bf16.msra.mxu1 %v1375_v15  ;;  %1211 = vmatprep.subr.bf16.mxu0 %v1376_v16  ;;  %v1399_v47 = vld [vmem:[#allocation5 + $0x188] sm:$0xff]   ;;  %v1404_v52 = vld [vmem:[#allocation5 + $0x158] sm:$0xff]   ;;  %v1408_v56 = vld [vmem:[#allocation5 + $0x160] sm:$0xff]  }
  0x38   :  { %1239 = vmatprep.subr.bf16.mxu1 %v1377_v17  ;;  %v1405_v53 = vld [vmem:[#allocation5 + $0x118] sm:$0xff]   ;;  %v1409_v57 = vld [vmem:[#allocation5 + $0x120] sm:$0xff]   ;;  %v62_v63 = vld [vmem:[#allocation2 + $0x48] sm:$0xff] }
  0x39   :  { %v1406_v54 = vld [vmem:[#allocation5 + $0x1d8] sm:$0xff]   ;;  %v1410_v58 = vld [vmem:[#allocation5 + $0x1e0] sm:$0xff]   ;;  %v66_v0 = vld [vmem:[#allocation2 + $0x68] sm:$0xff] }
  0x3a   :  { %1212 = vmatpush3.bf16.msra.mxu0 %v1378_v18  ;;  %v1407_v55 = vld [vmem:[#allocation5 + $0x198] sm:$0xff]   ;;  %v1411_v59 = vld [vmem:[#allocation5 + $0x1a0] sm:$0xff]   ;;  %v1127_v2 = vcombine.high %v62_v63, %v66_v0  ;;  %v1412_v3 = vld [vmem:[#allocation5 + $0x168] sm:$0xff]   ;;  %v1126_v4 = vcombine.low %v62_v63, %v66_v0 }
  0x3b   :  { %1240 = vmatpush3.bf16.msra.mxu1 %v1379_v19  ;;  %1213 = vmatprep.subr.bf16.mxu0 %v1380_v20  ;;  %v61_v60 = vld [vmem:[#allocation2 + $0x40] sm:$0xff]  ;;  %v1413_v5 = vld [vmem:[#allocation5 + $0x128] sm:$0xff]   ;;  %v1416_v8 = vld [vmem:[#allocation5 + $0x170] sm:$0xff]  }
  0x3c   :  { %1241 = vmatprep.subr.bf16.mxu1 %v1381_v21  ;;  %v65_v61 = vld [vmem:[#allocation2 + $0x60] sm:$0xff]  ;;  %v1414_v6 = vld [vmem:[#allocation5 + $0x1e8] sm:$0xff]   ;;  %v1417_v9 = vld [vmem:[#allocation5 + $0x130] sm:$0xff]  }
  0x3d   :  { %v1125_v62 = vcombine.high %v61_v60, %v65_v61  ;;  %v1124_v1 = vcombine.low %v61_v60, %v65_v61  ;;  %v1415_v7 = vld [vmem:[#allocation5 + $0x1a8] sm:$0xff]   ;;  %v1418_v10 = vld [vmem:[#allocation5 + $0x1f0] sm:$0xff]   ;;  %v1420_v12 = vld [vmem:[#allocation5 + $0x178] sm:$0xff]  }
  0x3e   :  { %1214 = vmatpush3.bf16.msra.mxu0 %v1382_v22  ;;  %v1419_v11 = vld [vmem:[#allocation5 + $0x1b0] sm:$0xff]   ;;  %v1421_v13 = vld [vmem:[#allocation5 + $0x138] sm:$0xff]   ;;  %v857_v33 = vld [vmem:[%s1614_s0] sm:$0xff] }
  0x3f   :  { %1242 = vmatpush3.bf16.msra.mxu1 %v1383_v23  ;;  %1215 = vmatprep.subr.bf16.mxu0 %v1384_v24  ;;  %v1422_v14 = vld [vmem:[#allocation5 + $0x1f8] sm:$0xff]   ;;  %v55_v15 = vld [vmem:[#allocation2 + $0x10] sm:$0xff]  ;;  %v858_v34 = vld [vmem:[%s1614_s0 + $0x8] sm:$0xff] }
  0x40   :  { %1243 = vmatprep.subr.bf16.mxu1 %v1385_v25  ;;  %v59_v16 = vld [vmem:[#allocation2 + $0x30] sm:$0xff]  ;;  %v1423_v19 = vld [vmem:[#allocation5 + $0x1b8] sm:$0xff]  }
  0x41   :  { %v1120_v17 = vcombine.low %v55_v15, %v59_v16  ;;  %v1121_v18 = vcombine.high %v55_v15, %v59_v16  ;;  %v56_v20 = vld [vmem:[#allocation2 + $0x18] sm:$0xff]  ;;  %v63_v24 = vld [vmem:[#allocation2 + $0x50] sm:$0xff] }
  0x42   :  { %1216 = vmatpush3.bf16.msra.mxu0 %v1386_v26  ;;  %v60_v21 = vld [vmem:[#allocation2 + $0x38] sm:$0xff]  ;;  %v67_v25 = vld [vmem:[#allocation2 + $0x70] sm:$0xff]  ;;  %v861_v26 = vld [vmem:[%s1616_s2] sm:$0x3] }
  0x43   :  { %1244 = vmatpush3.bf16.msra.mxu1 %v1387_v27  ;;  %1217 = vmatprep.subr.bf16.mxu0 %v1388_v28  ;;  %v1122_v22 = vcombine.low %v56_v20, %v60_v21  ;;  %v1123_v23 = vcombine.high %v56_v20, %v60_v21  ;;  %v1129_v27 = vcombine.high %v63_v24, %v67_v25  ;;  %v64_v28 = vld [vmem:[#allocation2 + $0x58] sm:$0xff] }
  0x44   :  { %1245 = vmatprep.subr.bf16.mxu1 %v1389_v29  ;;  %v68_v29 = vld [vmem:[#allocation2 + $0x78] sm:$0xff] }
  0x45   :  { %v1130_v32 = vcombine.low %v64_v28, %v68_v29  ;;  %v860_v36 = vld [vmem:[%s1614_s0 + $0x18] sm:$0xff] }
  0x46   :  { %1218 = vmatpush3.bf16.msra.mxu0 %v1390_v30  ;;  %v1131_v30 = vcombine.high %v64_v28, %v68_v29 }
  0x47   :  { %1246 = vmatpush3.bf16.msra.mxu1 %v1391_v31  ;;  %1259 = vmatprep.subr.bf16.mxu0 %v1392_v40  ;;  %v1128_v31 = vcombine.low %v63_v24, %v67_v25 }
  0x48   :  { %1287 = vmatprep.subr.bf16.mxu1 %v1394_v42 }
  0x49   :  { %694 = vmatmul.mubr.bf16.vlgmr.msra.gmra.mrb[0].mxu0 %v1116_v35  ;;  %v859_v35 = vld [vmem:[%s1614_s0 + $0x10] sm:$0xff] }
  0x4a   :  { %743 = vmatmul.mubr.bf16.vlgmr.msra.gmra.mrb[0].mxu1 %v1118_v38  ;;  %1260 = vmatpush3.bf16.msra.mxu0 %v1393_v41 }
  0x4b   :  { %1288 = vmatpush3.bf16.msra.mxu1 %v1395_v43  ;;  %1261 = vmatprep.subr.bf16.mxu0 %v1396_v44 }
  0x4c   :  { %1289 = vmatprep.subr.bf16.mxu1 %v1398_v46  ;;  %701 = vmatprep.mubr.bf16.mxu0 %v1125_v62 }
  0x4d   :  { %750 = vmatprep.mubr.bf16.mxu1 %v1127_v2 }
  0x4e   :  { %1262 = vmatpush3.bf16.msra.mxu0 %v1397_v45 }
  0x4f   :  { %1290 = vmatpush3.bf16.msra.mxu1 %v1399_v47  ;;  %1263 = vmatprep.subr.bf16.mxu0 %v1400_v48 }
  0x50   :  { %1291 = vmatprep.subr.bf16.mxu1 %v1402_v50 }
  0x51   :  { %702 = vmatmul.mubr.bf16.gmra.mrb[4].mxu0 %v1124_v1 }
  0x52   :  { %1264 = vmatpush3.bf16.msra.mxu0 %v1401_v49  ;;  %751 = vmatmul.mubr.bf16.gmra.mrb[4].mxu1 %v1126_v4 }
  0x53   :  { %1292 = vmatpush3.bf16.msra.mxu1 %v1403_v51  ;;  %1265 = vmatprep.subr.bf16.mxu0 %v1404_v52 }
  0x54   :  { %1293 = vmatprep.subr.bf16.mxu1 %v1406_v54  ;;  %791 = vmatprep.mubr.bf16.mxu0 %v1121_v18 }
  0x55   :  { %840 = vmatprep.mubr.bf16.mxu1 %v1123_v23 }
  0x56   :  { %1266 = vmatpush3.bf16.msra.mxu0 %v1405_v53 }
  0x57   :  { %1294 = vmatpush3.bf16.msra.mxu1 %v1407_v55  ;;  %1267 = vmatprep.subr.bf16.mxu0 %v1408_v56 }
  0x58   :  { %1295 = vmatprep.subr.bf16.mxu1 %v1410_v58 }
  0x5a   :  { %1268 = vmatpush3.bf16.msra.mxu0 %v1409_v57 }
  0x5b   :  { %1296 = vmatpush3.bf16.msra.mxu1 %v1411_v59  ;;  %1269 = vmatprep.subr.bf16.mxu0 %v1412_v3 }
  0x5c   :  { %1297 = vmatprep.subr.bf16.mxu1 %v1414_v6 }
  0x5e   :  { %1270 = vmatpush3.bf16.msra.mxu0 %v1413_v5 }
  0x5f   :  { %1298 = vmatpush3.bf16.msra.mxu1 %v1415_v7  ;;  %1271 = vmatprep.subr.bf16.mxu0 %v1416_v8 }
  0x60   :  { %1299 = vmatprep.subr.bf16.mxu1 %v1418_v10 }
  0x62   :  { %1272 = vmatpush3.bf16.msra.mxu0 %v1417_v9 }
  0x63   :  { %1300 = vmatpush3.bf16.msra.mxu1 %v1419_v11  ;;  %1273 = vmatprep.subr.bf16.mxu0 %v1420_v12 }
  0x64   :  { %1301 = vmatprep.subr.bf16.mxu1 %v1422_v14 }
  0x66   :  { %1274 = vmatpush3.bf16.msra.mxu0 %v1421_v13 }
  0x67   :  { %1302 = vmatpush3.bf16.msra.mxu1 %v1423_v19  ;;  %1325 = vmatprep.subr.msk.mxu0 %vm875_vm0, %v861_v26 }
  0x69   :  { %792 = vmatmul.mubr.bf16.vlgmr.msra.gmra.mrb[8].mxu0 %v1120_v17 }
  0x6a   :  { %799 = vmatprep.mubr.bf16.mxu0 %v1129_v27  ;;  %841 = vmatmul.mubr.bf16.vlgmr.msra.gmra.mrb[8].mxu1 %v1122_v22 }
  0x6b   :  { %1326 = vmatpush3.msk.msra.mxu0 %vm875_vm0, %v861_v26  ;;  %848 = vmatprep.mubr.bf16.mxu1 %v1131_v30 }
  0x71   :  { %800 = vmatmul.mubr.bf16.gmra.mrb[12].mxu0 %v1128_v31 }
  0x72   :  { %1327 = vmatprep.mubr.msk.f32.mxu0 %vm862_vm1, %v857_v33  ;;  %849 = vmatmul.mubr.bf16.gmra.mrb[12].mxu1 %v1130_v32 }
  0x79   :  { %1328 = vmatmul.mubr.msk.f32.vlgmr.msra.gmra.mrb[16].mxu0 %vm862_vm1, %v858_v34 }
  0x7a   :  { %1330 = vmatprep.mubr.msk.f32.mxu0 %vm862_vm1, %v859_v35 }
  0x7d   :  { %1331 = vmatmul.mubr.msk.f32.gmra.mrb[18].mxu0 %vm862_vm1, %v860_v36 }
 0x11c   :  { %v1219_v37 = vpop.f32.mrb[0].mxu0 }
 0x11d   :  { %v1247_v38 = vpop.f32.mrb[0].mxu1  ;;  %v1220_v39 = vpop.f32.mrb[1].mxu0 }
 0x11e   :  { %v1221_v40 = vadd.f32 %v1220_v39, %v1219_v37  ;;  %v1248_v41 = vpop.f32.mrb[1].mxu1  ;;  %v1222_v42 = vpop.f32.mrb[2].mxu0 }
 0x11f   :  { %v1249_v43 = vadd.f32 %v1248_v41, %v1247_v38  ;;  %v1250_v44 = vpop.f32.mrb[2].mxu1  ;;  %v1223_v45 = vpop.f32.mrb[3].mxu0 }
 0x120   :  { %v1224_v46 = vadd.f32 %v1223_v45, %v1222_v42  ;;  %v1251_v47 = vpop.f32.mrb[3].mxu1 }
 0x121   :  { %v745_v48 = vadd.f32 %v1249_v43, %v1221_v40  ;;  %v1252_v49 = vadd.f32 %v1251_v47, %v1250_v44  ;;  %v1201_v40 = vld [vmem:[%s1619_s5] ss:$0 sm:$0xff] }
 0x123   :  { %v748_v50 = vadd.f32 %v1252_v49, %v1224_v46 }
 0x124   :  { %v1225_v51 = vpop.f32.mrb[4].mxu0 }
 0x125   :  { %v1253_v52 = vpop.f32.mrb[4].mxu1  ;;  %v1226_v53 = vpop.f32.mrb[5].mxu0 }
 0x126   :  { %v1254_v54 = vpop.f32.mrb[5].mxu1  ;;  %v1227_v55 = vadd.f32 %v1226_v53, %v1225_v51  ;;  %v1228_v57 = vpop.f32.mrb[6].mxu0 }
 0x127   :  { %v1255_v56 = vadd.f32 %v1254_v54, %v1253_v52  ;;  %v1256_v58 = vpop.f32.mrb[6].mxu1  ;;  %v1229_v59 = vpop.f32.mrb[7].mxu0 }
 0x128   :  { %v1257_v60 = vpop.f32.mrb[7].mxu1  ;;  %v1230_v62 = vadd.f32 %v1229_v59, %v1228_v57 }
 0x129   :  { %v753_v61 = vadd.f32 %v1255_v56, %v1227_v55  ;;  %v1258_v63 = vadd.f32 %v1257_v60, %v1256_v58 }
 0x12b   :  { %v756_v0 = vadd.f32 %v1258_v63, %v1230_v62 }
 0x13c   :  { %v1275_v1 = vpop.f32.mrb[8].mxu0 }
 0x13d   :  { %v1276_v2 = vpop.f32.mrb[9].mxu0  ;;  %v1303_v5 = vpop.f32.mrb[8].mxu1 }
 0x13e   :  { %v1277_v3 = vadd.f32 %v1276_v2, %v1275_v1  ;;  %v1278_v4 = vpop.f32.mrb[10].mxu0  ;;  %v1304_v7 = vpop.f32.mrb[9].mxu1 }
 0x13f   :  { %v1279_v6 = vpop.f32.mrb[11].mxu0  ;;  %v1305_v10 = vadd.f32 %v1304_v7, %v1303_v5  ;;  %v1306_v11 = vpop.f32.mrb[10].mxu1  ;;  %v1520_v7 = vmov 0.0  }
 0x140   :  { %v794_v8 = vadd.f32 %v1277_v3, %v745_v48  ;;  %v1280_v9 = vadd.f32 %v1279_v6, %v1278_v4  ;;  %v1307_v12 = vpop.f32.mrb[11].mxu1  ;;  %v1518_v6 = vmov 0.0|0.0   ;;  %1341 = vmatprep.mubr.msk.f32.mxu1 %vm1519_vm2, %v1520_v7 }
 0x141   :  { %v1308_v15 = vadd.f32 %v1307_v12, %v1306_v11  ;;  %1344 = vmatprep.subr.bf16.mxu1 %v1518_v6 }
 0x142   :  { %v797_v13 = vadd.f32 %v1280_v9, %v748_v50  ;;  %v843_v14 = vadd.f32 %v1305_v10, %v794_v8 }
 0x144   :  { %v846_v16 = vadd.f32 %v1308_v15, %v797_v13  ;;  %v1281_v17 = vpop.f32.mrb[12].mxu0  ;;  %v968_v37 = vmul.f32 0.4, %v843_v14 }
 0x145   :  { %v1282_v18 = vpop.f32.mrb[13].mxu0  ;;  %v1309_v21 = vpop.f32.mrb[12].mxu1 }
 0x146   :  { %v1283_v19 = vadd.f32 %v1282_v18, %v1281_v17  ;;  %v1284_v20 = vpop.f32.mrb[14].mxu0  ;;  %v1310_v23 = vpop.f32.mrb[13].mxu1  ;;  %v969_v34 = vmul.f32 0.4, %v846_v16 }
 0x147   :  { %v1285_v22 = vpop.f32.mrb[15].mxu0  ;;  %v1311_v26 = vadd.f32 %v1310_v23, %v1309_v21  ;;  %v1312_v27 = vpop.f32.mrb[14].mxu1 }
 0x148   :  { %v802_v24 = vadd.f32 %v1283_v19, %v753_v61  ;;  %v1286_v25 = vadd.f32 %v1285_v22, %v1284_v20  ;;  %v1313_v28 = vpop.f32.mrb[15].mxu1  ;;  %v1023_v22 = vld [vmem:[%s1615_s1] sm:$0x3] }
 0x149   :  { %v1314_v31 = vadd.f32 %v1313_v28, %v1312_v27 }
 0x14a   :  { %v805_v29 = vadd.f32 %v1286_v25, %v756_v0  ;;  %v851_v30 = vadd.f32 %v1311_v26, %v802_v24 }
 0x14c   :  { %v854_v32 = vadd.f32 %v1314_v31, %v805_v29  ;;  %v1329_v33 = vpop.f32.mrb[16].mxu0  ;;  %v970_v46 = vmul.f32 0.4, %v851_v30 }
 0x14d   :  { %v965_v35 = vmul.f32 0.6, %v1329_v33  ;;  %v945_v36 = vpop.f32.mrb[17].mxu0 }
 0x14e   :  { %v964_v38 = vmul.f32 0.6, %v945_v36  ;;  %v971_v43 = vmul.f32 0.4, %v854_v32 }
 0x14f   :  { %v973_v39 = vadd.f32 %v969_v34, %v965_v35 }
 0x150   :  { %v972_v41 = vadd.f32 %v968_v37, %v964_v38  ;;  %v1332_v42 = vpop.f32.mrb[18].mxu0 }
 0x151   :  { %v967_v44 = vmul.f32 0.6, %v1332_v42  ;;  %v955_v45 = vpop.f32.mrb[19].mxu0  ;;  %v984_v52 = vadd.f32 %v1201_v40, %v973_v39 }
 0x152   :  { %v966_v47 = vmul.f32 0.6, %v955_v45  ;;  %v983_v48 = vadd.f32 %v1201_v40, %v972_v41 }
 0x153   :  { %v975_v49 = vadd.f32 %v971_v43, %v967_v44 }
 0x154   :  { %v974_v50 = vadd.f32 %v970_v46, %v966_v47  ;;  %987 = vmax.xlane.f32.xlu0 %v983_v48 }
 0x155   :  { %v986_v53 = vadd.f32 %v1201_v40, %v975_v49 }
 0x156   :  { %v985_v51 = vadd.f32 %v1201_v40, %v974_v50 }
 0x158   :  { %991 = vmax.xlane.f32.xlu1 %v985_v51  ;;  %989 = vmax.xlane.f32.xlu0 %v984_v52 }
 0x15c   :  { %993 = vmax.xlane.f32.xlu1 %v986_v53 }
 0x1e1   :  { %v988_v54 = vpop.xlane.xlu0 %987 }
 0x1e2   :  { %v995_v55 = vsub.f32 %v983_v48, %v988_v54 }
 0x1e4   :  { %v999_v56 = vmul.f32 1.442695, %v995_v55 }
 0x1e5   :  { %v992_v57 = vpop.xlane.xlu1 %991  ;;  %v990_v58 = vpop.xlane.xlu0 %989 }
 0x1e6   :  { %1424 = vpow2.f32 %v999_v56  ;;  %v997_v59 = vsub.f32 %v985_v51, %v992_v57  ;;  %v996_v60 = vsub.f32 %v984_v52, %v990_v58 }
 0x1e8   :  { %v1003_v61 = vmul.f32 1.442695, %v997_v59  ;;  %v1001_v62 = vmul.f32 1.442695, %v996_v60 }
 0x1e9   :  { %v994_v63 = vpop.xlane.xlu1 %993 }
 0x1ea   :  { %1426 = vpow2.f32 %v1003_v61  ;;  %v998_v0 = vsub.f32 %v986_v53, %v994_v63 }
 0x1eb   :  { %1428 = vpow2.f32 %v1001_v62 }
 0x1ec   :  { %v1005_v1 = vmul.f32 1.442695, %v998_v0 }
 0x1ee   :  { %1430 = vpow2.f32 %v1005_v1 }
 0x1f0   :  { %v1425_v2 = vpop.eup %1424 }
 0x1f1   :  { %1007 = vadd.xlane.f32.xlu0 %v1425_v2 }
 0x1f4   :  { %v1427_v3 = vpop.eup %1426 }
 0x1f5   :  { %v1429_v4 = vpop.eup %1428  ;;  %1011 = vadd.xlane.f32.xlu0 %v1427_v3 }
 0x1f6   :  { %1009 = vadd.xlane.f32.xlu1 %v1429_v4 }
 0x1f8   :  { %v1431_v5 = vpop.eup %1430 }
 0x1fa   :  { %1013 = vadd.xlane.f32.xlu1 %v1431_v5 }
 0x27e   :  { %v1008_v8 = vpop.xlane.xlu0 %1007 }
 0x27f   :  { %1432 = vrcp.f32 %v1008_v8 }
 0x282   :  { %v1012_v10 = vpop.xlane.xlu0 %1011 }
 0x283   :  { %v1010_v9 = vpop.xlane.xlu1 %1009 }
 0x284   :  { %1434 = vrcp.f32 %v1010_v9 }
 0x285   :  { %1436 = vrcp.f32 %v1012_v10 }
 0x287   :  { %v1014_v11 = vpop.xlane.xlu1 %1013 }
 0x288   :  { %1438 = vrcp.f32 %v1014_v11 }
 0x289   :  { %v1433_v12 = vpop.eup %1432 }
 0x28a   :  { %v1019_v14 = vmul.f32 %v1433_v12, %v1425_v2 }
 0x28e   :  { %v1435_v13 = vpop.eup %1434 }
 0x28f   :  { %v1020_v15 = vmul.f32 %v1435_v13, %v1429_v4  ;;  %v1437_v16 = vpop.eup %1436 }
 0x290   :  { %v1021_v19 = vmul.f32 %v1437_v16, %v1427_v3 }
 0x291   :  { %v1345_v17 = vpack.c.bf16 %v1020_v15, %v1019_v14 }
 0x292   :  { %v1439_v18 = vpop.eup %1438 }
 0x293   :  { %1346 = vmatpush3.bf16.msra.mxu1 %v1345_v17  ;;  %v1022_v20 = vmul.f32 %v1439_v18, %v1431_v5 }
 0x294   :  { %1347 = vmatprep.subr.bf16.mxu1 %v1518_v6 }
 0x295   :  { %v1348_v21 = vpack.c.bf16 %v1022_v20, %v1021_v19 }
 0x297   :  { %1349 = vmatpush3.bf16.msra.mxu1 %v1348_v21 }
 0x29a   :  { %1342 = vmatmul.mubr.msk.f32.vlgmr.msra.gmra.mrb[16].mxu1 %vm1024_vm3, %v1023_v22 }
 0x36d   :  { %v1094_v23 = vpop.f32.mrb[16].mxu1 }
 0x36e   :  { %v1098_v24 = vmul.f32 0.06666667, %v1094_v23  ;;  %v1343_v25 = vpop.f32.mrb[17].mxu1 }
 0x370   :  { %1099 = vst [vmem:[#allocation7] sm:$0x3] %v1098_v24 }
 0x371   :  { %1495 = shalt.err (!%p1492_p6)
}
 0x372   :  { %s1496_s1 = scalar_lea.hbm %s1620_s6, 32 }
 0x373   :  { %p1497_p7 = scmp.ne.s32.totalorder %s1620_s6, %s1496_s1  ;;  %p1500_p8 = scmp.lt.u32.totalorder %s1496_s1, %s1620_s6 }
 0x375   :  { %p1502_p9 = pnand %p1500_p8, %p1497_p7 }
 0x377   :  { %1505 = shalt.err (!%p1502_p9)
}
 0x378   :  { %1109 = dma.vmem_to_hbm [thread:$0]  %s1107_s11, 32, %s1620_s6, [#allocation4]  }
 0x379   :  { %1510 = dma.done.wait [#allocation4], 32  }
 0x37a   :  { %1511 = vsyncadd [#allocation4], 4294967264 }
 0x37b   :  { %1113 = vsyncpa [#allocation3], 1 }
 0x37c   :  { %1114 = vsyncpa [#allocation6], 1 }
 0x37d   :  { %1115 = vsyncpa [#allocation4], 1 }

</bundles_post_ra>
